<compile_context>
chip_gen: v7x
topology: tpu7x:2x2x1
jax: 0.10.0
libtpu: 0.0.40
codegen_flags: <defaults>
</compile_context>

<pallas_src>
import jax
import jax.numpy as jnp
from jax.experimental import pallas as pl
from jax.experimental.pallas import tpu as pltpu

IN_F = 2     # input feature dim
HID = 64     # hidden width
OUT_F = 1    # output feature dim

_HIGHEST = jax.lax.Precision.HIGHEST


def _round_up(x, m):
    return (x + m - 1) // m * m


def _mlp_kernel(xT_ref, w1t_ref, b1_ref, w2t_ref, b2_ref, w3_ref, b3_ref, o_ref):
    # xT_ref: (2, TN)     w1t: (64, 2)   b1: (64, 1)
    # w2t:    (64, 64)    b2:  (64, 1)
    # w3:     (1, 64)     b3:  SMEM (1,)   o_ref: (1, TN)
    xT = xT_ref[...]                                   # (2, TN)
    w1t = w1t_ref[...]                                 # (64, 2)

    # Layer 1: contraction dim is only 2 -> two VPU broadcast FMAs, no MXU.
    h1 = (w1t[:, 0:1] * xT[0:1, :]
          + w1t[:, 1:2] * xT[1:2, :]
          + b1_ref[...])                               # (64, TN)
    h1 = jnp.maximum(h1, 0.0)

    # Layer 2: the only big MXU matmul; batch sits on the MXU N axis.
    h2 = jnp.dot(w2t_ref[...], h1,
                 preferred_element_type=jnp.float32,
                 precision=_HIGHEST)                   # (64, TN)
    h2 = jnp.maximum(h2 + b2_ref[...], 0.0)

    # Layer 3: (1,64)@(64,TN) -> result is already the lane-dense output row.
    o_ref[...] = (jnp.dot(w3_ref[...], h2,
                          preferred_element_type=jnp.float32,
                          precision=_HIGHEST)
                  + b3_ref[0])                         # (1, TN)


def discriminator_forward(x, params, *, tile_n=4096):
    """x: (N, 2) float32.  Returns net(x).squeeze(): (N,) for N>1, scalar for N==1."""
    w1, b1, w2, b2, w3, b3 = params
    n = x.shape[0]
    x = x.astype(jnp.float32)

    # Lane-dense batch tile (multiple of 128).  Cap the tile so the grid has
    # at least 2 "parallel" steps whenever the batch allows it (v7x: 2 TCs).
    tile_n = _round_up(max(tile_n, 128), 128)
    tn = min(tile_n, _round_up(pl.cdiv(n, 2), 128))
    n_pad = _round_up(n, tn)

    # (N, 2) -> (2, N_pad): batch on the 128-lane axis.  Padded columns are
    # zeros; their outputs are computed and dropped, real rows are unchanged.
    xT = jnp.pad(x, ((0, n_pad - n), (0, 0))).T        # (2, n_pad)

    # Weight prep (tiny, done once in the wrapper).
    w1t = w1.T                                          # (64, 2)
    b1c = b1.reshape(HID, 1)                            # (64, 1)
    w2t = w2.T                                          # (64, 64)
    b2c = b2.reshape(HID, 1)                            # (64, 1)
    w3r = w3.reshape(1, HID)                            # (1, 64)
    b3s = b3.reshape(1)                                 # (1,) scalar -> SMEM

    const = lambda i: (0, 0)    # weights/biases: same full block every step

    weight_bytes = 4 * (IN_F * HID + HID + HID * HID + HID + HID * OUT_F + OUT_F)
    cost = pl.CostEstimate(
        flops=2 * n_pad * (IN_F * HID + HID * HID + HID * OUT_F),
        transcendentals=0,
        bytes_accessed=n_pad * (IN_F + OUT_F) * 4 + weight_bytes,
    )

    out = pl.pallas_call(
        _mlp_kernel,
        out_shape=jax.ShapeDtypeStruct((1, n_pad), jnp.float32),
        grid=(n_pad // tn,),
        in_specs=[
            pl.BlockSpec((IN_F, tn), lambda i: (0, i)),          # x^T tile (lane-dense)
            pl.BlockSpec((HID, IN_F), const),                    # w1^T
            pl.BlockSpec((HID, 1), const),                       # b1 column
            pl.BlockSpec((HID, HID), const),                     # w2^T
            pl.BlockSpec((HID, 1), const),                       # b2 column
            pl.BlockSpec((1, HID), const),                       # w3 row
            pl.BlockSpec(memory_space=pltpu.MemorySpace.SMEM),   # b3 scalar
        ],
        out_specs=pl.BlockSpec((1, tn), lambda i: (0, i)),       # lane-dense output row
        compiler_params=pltpu.CompilerParams(
            dimension_semantics=("parallel",)),
        cost_estimate=cost,
    )(xT, w1t, b1c, w2t, b2c, w3r, b3s)

    # (1, n_pad) -> (n, 1) -> squeeze(); matches torch .squeeze() incl. N==1 -> scalar.
    return jnp.squeeze(out[0, :n].reshape(n, OUT_F))


def init_params(key):
    """Deterministic init mirroring PyTorch nn.Linear default (U[-1/sqrt(fan_in), ...])."""
    ks = jax.random.split(key, 6)

    def lin(kw, kb, fan_in, fan_out):
        bound = 1.0 / (fan_in ** 0.5)
        w = jax.random.uniform(kw, (fan_in, fan_out), jnp.float32, -bound, bound)
        b = jax.random.uniform(kb, (fan_out,), jnp.float32, -bound, bound)
        return w, b

    w1, b1 = lin(ks[0], ks[1], IN_F, HID)
    w2, b2 = lin(ks[2], ks[3], HID, HID)
    w3, b3 = lin(ks[4], ks[5], HID, OUT_F)
    return (w1, b1, w2, b2, w3, b3)


def _reference_forward(x, params):
    w1, b1, w2, b2, w3, b3 = params
    h = jnp.maximum(jnp.dot(x, w1, precision=_HIGHEST) + b1, 0.0)
    h = jnp.maximum(jnp.dot(h, w2, precision=_HIGHEST) + b2, 0.0)
    return (jnp.dot(h, w3, precision=_HIGHEST) + b3).squeeze()


if __name__ == "__main__":
    key = jax.random.PRNGKey(0)
    k_param, k_x1, k_x2, k_x3 = jax.random.split(key, 4)
    params = init_params(k_param)

    # Small batch (single grid step, padded to one 128-lane tile).
    x1 = jax.random.normal(k_x1, (8, IN_F), jnp.float32)
    out1 = jax.block_until_ready(discriminator_forward(x1, params))
    ref1 = _reference_forward(x1, params)
    assert out1.shape == (8,), out1.shape
    assert jnp.allclose(out1, ref1, atol=1e-5, rtol=1e-5), (out1, ref1)

    # Ragged batch exercising the multi-tile grid + remainder-padding path.
    x2 = jax.random.normal(k_x2, (300, IN_F), jnp.float32)
    out2 = jax.block_until_ready(discriminator_forward(x2, params, tile_n=128))
    ref2 = _reference_forward(x2, params)
    assert out2.shape == (300,), out2.shape
    assert jnp.allclose(out2, ref2, atol=1e-5, rtol=1e-5), (out2, ref2)

    # N == 1: torch .squeeze() on a (1,1) result gives a 0-d scalar.
    x3 = jax.random.normal(k_x3, (1, IN_F), jnp.float32)
    out3 = jax.block_until_ready(discriminator_forward(x3, params))
    ref3 = _reference_forward(x3, params)
    assert out3.shape == (), out3.shape
    assert jnp.allclose(out3, ref3, atol=1e-5, rtol=1e-5), (out3, ref3)

    print("KERNEL_OK")
</pallas_src>

<mosaic_0001>
module attributes {stable_mosaic.version = 11 : i64} {
  func.func @_mlp_kernel(%arg0: i32, %arg1: memref<2x128xf32, #tpu.memory_space<vmem>>, %arg2: memref<64x2xf32, #tpu.memory_space<vmem>>, %arg3: memref<64x1xf32, #tpu.memory_space<vmem>>, %arg4: memref<64x64xf32, #tpu.memory_space<vmem>>, %arg5: memref<64x1xf32, #tpu.memory_space<vmem>>, %arg6: memref<1x64xf32, #tpu.memory_space<vmem>>, %arg7: memref<1xf32, #tpu.memory_space<smem>>, %arg8: memref<1x128xf32, #tpu.memory_space<vmem>>) attributes {dimension_semantics = [#tpu.dimension_semantics<parallel>], iteration_bounds = array<i64: 1>, scalar_prefetch = 0 : i64, scratch_operands = 0 : i64, tpu.core_type = #tpu.core_type<tc>, window_params = [{transform_indices = @transform_0, window_bounds = array<i64: 2, 128>}, {pipeline_mode = #tpu.pipeline_mode<synchronous>, transform_indices = @transform_1, window_bounds = array<i64: 64, 2>}, {pipeline_mode = #tpu.pipeline_mode<synchronous>, transform_indices = @transform_2, window_bounds = array<i64: 64, 1>}, {pipeline_mode = #tpu.pipeline_mode<synchronous>, transform_indices = @transform_3, window_bounds = array<i64: 64, 64>}, {pipeline_mode = #tpu.pipeline_mode<synchronous>, transform_indices = @transform_4, window_bounds = array<i64: 64, 1>}, {pipeline_mode = #tpu.pipeline_mode<synchronous>, transform_indices = @transform_5, window_bounds = array<i64: 1, 64>}, {transform_indices = @transform_6, window_bounds = array<i64: 1>}, {transform_indices = @transform_7, window_bounds = array<i64: 1, 128>}]} {
    %c0 = arith.constant 0 : index
    %c0_0 = arith.constant 0 : index
    %0 = vector.load %arg1[%c0, %c0_0] : memref<2x128xf32, #tpu.memory_space<vmem>>, vector<2x128xf32>
    %c0_1 = arith.constant 0 : index
    %c0_2 = arith.constant 0 : index
    %1 = vector.load %arg2[%c0_1, %c0_2] : memref<64x2xf32, #tpu.memory_space<vmem>>, vector<64x2xf32>
    %2 = vector.extract_strided_slice %1 {offsets = [0, 0], sizes = [64, 1], strides = [1, 1]} : vector<64x2xf32> to vector<64x1xf32>
    %3 = vector.extract_strided_slice %0 {offsets = [0, 0], sizes = [1, 128], strides = [1, 1]} : vector<2x128xf32> to vector<1x128xf32>
    %4 = vector.broadcast %2 : vector<64x1xf32> to vector<64x128xf32>
    %5 = vector.broadcast %3 : vector<1x128xf32> to vector<64x128xf32>
    %6 = arith.mulf %4, %5 : vector<64x128xf32>
    %7 = vector.extract_strided_slice %1 {offsets = [0, 1], sizes = [64, 1], strides = [1, 1]} : vector<64x2xf32> to vector<64x1xf32>
    %8 = vector.extract_strided_slice %0 {offsets = [1, 0], sizes = [1, 128], strides = [1, 1]} : vector<2x128xf32> to vector<1x128xf32>
    %9 = vector.broadcast %7 : vector<64x1xf32> to vector<64x128xf32>
    %10 = vector.broadcast %8 : vector<1x128xf32> to vector<64x128xf32>
    %11 = arith.mulf %9, %10 : vector<64x128xf32>
    %12 = arith.addf %6, %11 : vector<64x128xf32>
    %c0_3 = arith.constant 0 : index
    %c0_4 = arith.constant 0 : index
    %13 = vector.load %arg3[%c0_3, %c0_4] : memref<64x1xf32, #tpu.memory_space<vmem>>, vector<64x1xf32>
    %14 = vector.broadcast %13 : vector<64x1xf32> to vector<64x128xf32>
    %15 = arith.addf %12, %14 : vector<64x128xf32>
    %cst = arith.constant 0.000000e+00 : f32
    %16 = vector.broadcast %cst : f32 to vector<64x128xf32>
    %17 = arith.maximumf %15, %16 : vector<64x128xf32>
    %c0_5 = arith.constant 0 : index
    %c0_6 = arith.constant 0 : index
    %18 = vector.load %arg4[%c0_5, %c0_6] : memref<64x64xf32, #tpu.memory_space<vmem>>, vector<64x64xf32>
    %cst_7 = arith.constant dense<0.000000e+00> : vector<64x128xf32>
    %19 = tpu.matmul %18, %17, %cst_7 {dimension_numbers = #tpu.dot_dimension_numbers<[1], [0], [0], [1], [0, 0, 1, 1], [], []>, precision = #tpu.contract_precision<fp32>} : vector<64x64xf32>, vector<64x128xf32>, vector<64x128xf32> -> vector<64x128xf32>
    %c0_8 = arith.constant 0 : index
    %c0_9 = arith.constant 0 : index
    %20 = vector.load %arg5[%c0_8, %c0_9] : memref<64x1xf32, #tpu.memory_space<vmem>>, vector<64x1xf32>
    %21 = vector.broadcast %20 : vector<64x1xf32> to vector<64x128xf32>
    %22 = arith.addf %19, %21 : vector<64x128xf32>
    %cst_10 = arith.constant 0.000000e+00 : f32
    %23 = vector.broadcast %cst_10 : f32 to vector<64x128xf32>
    %24 = arith.maximumf %22, %23 : vector<64x128xf32>
    %c0_11 = arith.constant 0 : index
    %c0_12 = arith.constant 0 : index
    %25 = vector.load %arg6[%c0_11, %c0_12] : memref<1x64xf32, #tpu.memory_space<vmem>>, vector<1x64xf32>
    %cst_13 = arith.constant dense<0.000000e+00> : vector<1x128xf32>
    %26 = tpu.matmul %25, %24, %cst_13 {dimension_numbers = #tpu.dot_dimension_numbers<[1], [0], [0], [1], [0, 0, 1, 1], [], []>, precision = #tpu.contract_precision<fp32>} : vector<1x64xf32>, vector<64x128xf32>, vector<1x128xf32> -> vector<1x128xf32>
    %c0_14 = arith.constant 0 : index
    %27 = memref.load %arg7[%c0_14] : memref<1xf32, #tpu.memory_space<smem>>
    %28 = vector.broadcast %27 : f32 to vector<1x128xf32>
    %29 = arith.addf %26, %28 : vector<1x128xf32>
    %c0_15 = arith.constant 0 : index
    %c0_16 = arith.constant 0 : index
    %30 = vector.load %arg8[%c0_15, %c0_16] : memref<1x128xf32, #tpu.memory_space<vmem>>, vector<1x128xf32>
    tpu.vector_store %arg8[%c0_15, %c0_16], %29 {strides = array<i32>} : memref<1x128xf32, #tpu.memory_space<vmem>>, vector<1x128xf32>,
    return
  }
  func.func @transform_0(%arg0: i32) -> (i32, i32) {
    %c0_i32 = arith.constant 0 : i32
    %c0_i32_0 = arith.constant 0 : i32
    return %c0_i32, %arg0 : i32, i32
  }
  func.func @transform_1(%arg0: i32) -> (i32, i32) {
    %c0_i32 = arith.constant 0 : i32
    %c0_i32_0 = arith.constant 0 : i32
    %c0_i32_1 = arith.constant 0 : i32
    return %c0_i32, %c0_i32_0 : i32, i32
  }
  func.func @transform_2(%arg0: i32) -> (i32, i32) {
    %c0_i32 = arith.constant 0 : i32
    %c0_i32_0 = arith.constant 0 : i32
    %c0_i32_1 = arith.constant 0 : i32
    return %c0_i32, %c0_i32_0 : i32, i32
  }
  func.func @transform_3(%arg0: i32) -> (i32, i32) {
    %c0_i32 = arith.constant 0 : i32
    %c0_i32_0 = arith.constant 0 : i32
    %c0_i32_1 = arith.constant 0 : i32
    return %c0_i32, %c0_i32_0 : i32, i32
  }
  func.func @transform_4(%arg0: i32) -> (i32, i32) {
    %c0_i32 = arith.constant 0 : i32
    %c0_i32_0 = arith.constant 0 : i32
    %c0_i32_1 = arith.constant 0 : i32
    return %c0_i32, %c0_i32_0 : i32, i32
  }
  func.func @transform_5(%arg0: i32) -> (i32, i32) {
    %c0_i32 = arith.constant 0 : i32
    %c0_i32_0 = arith.constant 0 : i32
    %c0_i32_1 = arith.constant 0 : i32
    return %c0_i32, %c0_i32_0 : i32, i32
  }
  func.func @transform_6(%arg0: i32) -> i32 {
    %c0_i32 = arith.constant 0 : i32
    %c0_i32_0 = arith.constant 0 : i32
    return %c0_i32 : i32
  }
  func.func @transform_7(%arg0: i32) -> (i32, i32) {
    %c0_i32 = arith.constant 0 : i32
    %c0_i32_0 = arith.constant 0 : i32
    return %c0_i32, %arg0 : i32, i32
  }
}

</mosaic_0001>

<bundles_post_ra>
// kernel: tpu_custom_call.1
= control target key start
LH: loop header
LB: loop body
LE: loop exit
PB: predicated region body
PF: predicated region fallthrough
CT: control target
= control target key end

     0   :  { %v2389_v2 = vmov 1   ;;  %s2902_s0 = inlined_call_operand.vmem [shape: f32[2,128], index: 0, kind: input, shape index: {}]   ;;  %s2903_s1 = inlined_call_operand.vmem [shape: f32[64,2], index: 1, kind: input, shape index: {}]   ;;  %s2904_s2 = inlined_call_operand.vmem [shape: f32[64,1], index: 2, kind: input, shape index: {}]   ;;  %s2905_s3 = inlined_call_operand.vmem [shape: f32[64,64], index: 3, kind: input, shape index: {}]   ;;  %s2906_s4 = inlined_call_operand.vmem [shape: f32[64,1], index: 4, kind: input, shape index: {}]   ;;  %s2907_s5 = inlined_call_operand.vmem [shape: f32[1,64], index: 5, kind: input, shape index: {}]   ;;  %s2908_s6 = inlined_call_operand.<no memory space> [shape: f32[1], index: 6, kind: input, shape index: {}]   ;;  %s2909_s7 = inlined_call_operand.hbm [shape: f32[1,128], index: 7, kind: output, shape index: {}]  }
   0x1   :  { %v31_v0 = vld [vmem:[%s2903_s1 + $0x10] sm:$0xff]  ;;  %v29_v1 = vld [vmem:[%s2903_s1] sm:$0xff]  ;;  %2357 = vset.pattern.permute.xlu0 %v2389_v2  ;;  %2355 = vset.pattern.permute.xlu1 %v2389_v2  ;;  %v30_v4 = vld [vmem:[%s2903_s1 + $0x8] sm:$0xff] }
   0x2   :  { %98 = vperm.xlu0 %2357, %v31_v0   ;;  %90 = vperm.xlu1 %2355, %v29_v1   ;;  %v33_v3 = vld [vmem:[%s2903_s1 + $0x20] sm:$0xff]  ;;  %v35_v5 = vld [vmem:[%s2903_s1 + $0x30] sm:$0xff]  ;;  %v32_v6 = vld [vmem:[%s2903_s1 + $0x18] sm:$0xff] }
   0x6   :  { %106 = vperm.xlu0 %2357, %v33_v3   ;;  %94 = vperm.xlu1 %2355, %v30_v4  }
   0x7   :  { %13 = vsyncpa [#allocation4], 0  ;;  %v2390_v7 = vmov 0   ;;  %v141_v8 = vld [vmem:[%s2904_s2] sm:$0xff]  ;;  %v142_v9 = vld [vmem:[%s2904_s2 + $0x8] sm:$0xff]  ;;  %vm261_vm0 = vcmask 523264   ;;  %v77_v35 = vlaneseq }
   0x8   :  { %v34_v10 = vld [vmem:[%s2903_s1 + $0x28] sm:$0xff]  ;;  %v144_v11 = vld [vmem:[%s2904_s2 + $0x18] sm:$0xff]  ;;  %v213_v13 = vld [vmem:[%s2906_s4] sm:$0xff]  ;;  %vm2392_vm1 = vmmov 0   ;;  %s2394_s18 = smov [#allocation3]  }
   0x9   :  { %v146_v12 = vld [vmem:[%s2904_s2 + $0x28] sm:$0xff]  ;;  %v143_v14 = vld [vmem:[%s2904_s2 + $0x10] sm:$0xff]  ;;  %v217_v16 = vld [vmem:[%s2906_s4 + $0x20] sm:$0xff]  ;;  %v78_v38 = vshrl.u32 %v77_v35, 7  ;;  %s1682_s19 = sshll.u32 %s2394_s18, 4  ;;  %s1683_s19 = int_to_ptr.vmem [resolvable:$true] %s1682_s19 }
   0xa   :  { %114 = vperm.xlu0 %2357, %v35_v5   ;;  %2356 = vset.pattern.permute.xlu1 %v2390_v7  ;;  %v215_v15 = vld [vmem:[%s2906_s4 + $0x10] sm:$0xff]  ;;  %v36_v17 = vld [vmem:[%s2903_s1 + $0x38] sm:$0xff]  ;;  %v145_v19 = vld [vmem:[%s2904_s2 + $0x20] sm:$0xff]  ;;  %s2365_s20 = scalar_lea.vmem %s1683_s19, 16  ;;  %s2369_s21 = scalar_lea.vmem %s1683_s19, 32 }
   0xb   :  { %54 = vperm.xlu1 %2356, %v32_v6   ;;  %v219_v18 = vld [vmem:[%s2906_s4 + $0x30] sm:$0xff]  ;;  %v148_v21 = vld [vmem:[%s2904_s2 + $0x38] sm:$0xff]  ;;  %v205_v22 = vld [vmem:[%s2905_s3] sm:$0xff]  ;;  %v123_v41 = vsub.s32 1, %v78_v38  ;;  %v79_v42 = vsub.s32 0, %v78_v38  ;;  %p2366_p0 = scmp.ne.s32.totalorder %s1683_s19, %s2365_s20  ;;  %p2370_p1 = scmp.lt.s32.totalorder %s1683_s19, %s1683_s19 }
   0xc   :  { %v147_v20 = vld [vmem:[%s2904_s2 + $0x30] sm:$0xff]  ;;  %v263_v23 = vsel %vm261_vm0, %v205_v22, 0  ;;  %v214_v24 = vld [vmem:[%s2906_s4 + $0x8] sm:$0xff]  ;;  %v216_v27 = vld [vmem:[%s2906_s4 + $0x18] sm:$0xff]  ;;  %p2371_p2 = scmp.lt.s32.totalorder %s2369_s21, %s2365_s20 }
   0xd   :  { %v2502_v25 = vand.u32 4294901760, %v263_v23  ;;  %v218_v30 = vld [vmem:[%s2906_s4 + $0x28] sm:$0xff]  ;;  %v220_v32 = vld [vmem:[%s2906_s4 + $0x38] sm:$0xff]  ;;  %v28_v43 = vld [vmem:[%s2902_s0] sm:$0x3] }
   0xe   :  { %2362 = vset.pattern.permute.xlu0 %v2390_v7  ;;  %v2525_v45 = vrot.slane %v28_v43, %v123_v41  ;;  %v2527_v46 = vrot.slane %v28_v43, %v79_v42  ;;  %v208_v35 = vld [vmem:[%s2905_s3 + $0x18] sm:$0xff]  ;;  %p2372_p3 = por %p2371_p2, %p2370_p1 }
   0xf   :  { %39 = vperm.xlu0 %2362, %v29_v1   ;;  %2358 = vset.pattern.permute.xlu1 %v2389_v2  ;;  %v2505_v26 = vsub.f32 %v263_v23, %v2502_v25 }
  0x10   :  { %102 = vperm.xlu1 %2358, %v32_v6   ;;  %p2373_p4 = pnand %p2372_p3, %p2366_p0 }
  0x11   :  { %v361_v28 = vand.u32 4294901760, %v2505_v26 }
  0x13   :  { %44 = vperm.xlu0 %2362, %v30_v4   ;;  %v362_v29 = vsub.f32 %v2505_v26, %v361_v28 }
  0x14   :  { %2359 = vset.pattern.permute.xlu1 %v2390_v7 }
  0x15   :  { %151 = vperm.xlu1 %2359, %v141_v8   ;;  %v363_v31 = vand.u32 4294901760, %v362_v29 }
  0x17   :  { %49 = vperm.xlu0 %2362, %v31_v0   ;;  %1856 = vmatprep.mubr.f32.mxu0 %v363_v31 }
  0x19   :  { %59 = vperm.xlu1 %2359, %v33_v3  }
  0x1b   :  { %156 = vperm.xlu0 %2362, %v142_v9  }
  0x1d   :  { %64 = vperm.xlu1 %2359, %v34_v10  }
  0x1f   :  { %166 = vperm.xlu0 %2362, %v144_v11  }
  0x21   :  { %2360 = vset.pattern.permute.xlu1 %v2389_v2 }
  0x22   :  { %110 = vperm.xlu1 %2360, %v34_v10  }
  0x23   :  { %176 = vperm.xlu0 %2362, %v146_v12  }
  0x26   :  { %2361 = vset.pattern.permute.xlu1 %v2390_v7 }
  0x27   :  { %223 = vperm.xlu0 %2362, %v213_v13   ;;  %161 = vperm.xlu1 %2361, %v143_v14  }
  0x2b   :  { %233 = vperm.xlu0 %2362, %v215_v15   ;;  %69 = vperm.xlu1 %2361, %v35_v5  }
  0x2f   :  { %243 = vperm.xlu0 %2362, %v217_v16   ;;  %74 = vperm.xlu1 %2361, %v36_v17  }
  0x33   :  { %253 = vperm.xlu0 %2362, %v219_v18   ;;  %2363 = vset.pattern.permute.xlu1 %v2389_v2 }
  0x34   :  { %118 = vperm.xlu1 %2363, %v36_v17  }
  0x38   :  { %2364 = vset.pattern.permute.xlu1 %v2390_v7 }
  0x39   :  { %171 = vperm.xlu1 %2364, %v145_v19  }
  0x3d   :  { %181 = vperm.xlu1 %2364, %v147_v20  }
  0x41   :  { %186 = vperm.xlu1 %2364, %v148_v21  }
  0x45   :  { %228 = vperm.xlu1 %2364, %v214_v24   ;;  %v206_v24 = vld [vmem:[%s2905_s3 + $0x8] sm:$0xff] }
  0x49   :  { %238 = vperm.xlu1 %2364, %v216_v27   ;;  %v207_v27 = vld [vmem:[%s2905_s3 + $0x10] sm:$0xff] }
  0x4d   :  { %248 = vperm.xlu1 %2364, %v218_v30  }
  0x51   :  { %258 = vperm.xlu1 %2364, %v220_v32  }
  0x81   :  { %v91_v33 = vpop.permute.xlu1 %90  ;;  %v99_v34 = vpop.permute.xlu0 %98 }
  0x82   :  { %v125_v50 = vmul.f32 %v2525_v45, %v91_v33  ;;  %v127_v5 = vmul.f32 %v2525_v45, %v99_v34  ;;  %v266_v33 = vsel %vm261_vm0, %v206_v24, 0 }
  0x83   :  { %v2560_v38 = vand.u32 4294901760, %v266_v33 }
  0x85   :  { %v95_v36 = vpop.permute.xlu1 %94  ;;  %v107_v37 = vpop.permute.xlu0 %106 }
  0x86   :  { %v126_v55 = vmul.f32 %v2525_v45, %v95_v36  ;;  %v129_v29 = vmul.f32 %v2525_v45, %v107_v37  ;;  %v269_v36 = vsel %vm261_vm0, %v207_v27, 0  ;;  %v272_v37 = vsel %vm261_vm0, %v208_v35, 0 }
  0x89   :  { %v2520_v39 = vpop.permute.xlu0 %114 }
  0x8a   :  { %v55_v40 = vpop.permute.xlu1 %54 }
  0x8b   :  { %v84_v1 = vmul.f32 %v2527_v46, %v55_v40 }
  0x8e   :  { %v40_v44 = vpop.permute.xlu0 %39 }
  0x8f   :  { %v103_v47 = vpop.permute.xlu1 %102  ;;  %v81_v48 = vmul.f32 %v2527_v46, %v40_v44 }
  0x90   :  { %v128_v63 = vmul.f32 %v2525_v45, %v103_v47  ;;  %v2566_v47 = vand.u32 4294901760, %v269_v36 }
  0x91   :  { %v133_v53 = vadd.f32 %v125_v50, %v81_v48  ;;  %v209_v48 = vld [vmem:[%s2905_s3 + $0x20] sm:$0xff] }
  0x92   :  { %v45_v49 = vpop.permute.xlu0 %44  ;;  %v136_v8 = vadd.f32 %v128_v63, %v84_v1  ;;  %v211_v63 = vld [vmem:[%s2905_s3 + $0x30] sm:$0xff] }
  0x93   :  { %v82_v52 = vmul.f32 %v2527_v46, %v45_v49  ;;  %v131_v49 = vmul.f32 %v2525_v45, %v2520_v39 }
  0x94   :  { %v152_v51 = vpop.permute.xlu1 %151 }
  0x95   :  { %v189_v56 = vadd.f32 %v152_v51, %v133_v53  ;;  %v134_v58 = vadd.f32 %v126_v55, %v82_v52  ;;  %v210_v51 = vld [vmem:[%s2905_s3 + $0x28] sm:$0xff]  ;;  %v2579_v53 = vsub.f32 %v266_v33, %v2560_v38 }
  0x96   :  { %v50_v54 = vpop.permute.xlu0 %49 }
  0x97   :  { %v197_v60 = vmax.f32 %v189_v56, 0.0  ;;  %v83_v6 = vmul.f32 %v2527_v46, %v50_v54  ;;  %v2581_v54 = vand.u32 4294901760, %v272_v37 }
  0x98   :  { %v60_v57 = vpop.permute.xlu1 %59 }
  0x99   :  { %v287_v2 = vand.u32 4294901760, %v197_v60  ;;  %v135_v11 = vadd.f32 %v127_v5, %v83_v6  ;;  %v85_v30 = vmul.f32 %v2527_v46, %v60_v57  ;;  %v371_v6 = vand.u32 4294901760, %v2579_v53 }
  0x9a   :  { %v157_v59 = vpop.permute.xlu0 %156 }
  0x9b   :  { %v190_v61 = vadd.f32 %v157_v59, %v134_v58  ;;  %v137_v41 = vadd.f32 %v129_v29, %v85_v30  ;;  %v2576_v52 = vsub.f32 %v197_v60, %v287_v2  ;;  %v275_v58 = vsel %vm261_vm0, %v209_v48, 0 }
  0x9c   :  { %v65_v62 = vpop.permute.xlu1 %64  ;;  %v278_v60 = vsel %vm261_vm0, %v210_v51, 0 }
  0x9d   :  { %v198_v0 = vmax.f32 %v190_v61, 0.0  ;;  %v86_v21 = vmul.f32 %v2527_v46, %v65_v62  ;;  %v2587_v62 = vsub.f32 %v269_v36, %v2566_v47 }
  0x9e   :  { %v167_v4 = vpop.permute.xlu0 %166 }
  0x9f   :  { %v290_v3 = vand.u32 4294901760, %v198_v0  ;;  %v192_v10 = vadd.f32 %v167_v4, %v136_v8  ;;  %v442_v4 = vand.u32 4294901760, %v2576_v52  ;;  %v2603_v8 = vand.u32 4294901760, %v275_v58 }
  0xa1   :  { %v2537_v7 = vpack.c.bf16 %v290_v3, %v287_v2  ;;  %v111_v9 = vpop.permute.xlu1 %110  ;;  %v200_v13 = vmax.f32 %v192_v10, 0.0  ;;  %v2564_v42 = vsub.f32 %v198_v0, %v290_v3  ;;  %v212_v3 = vld [vmem:[%s2905_s3 + $0x38] sm:$0xff]  ;;  %v2628_v24 = vsub.f32 %v275_v58, %v2603_v8 }
  0xa2   :  { %v130_v19 = vmul.f32 %v2525_v45, %v111_v9  ;;  %v177_v31 = vpop.permute.xlu0 %176 }
  0xa3   :  { %2123 = vmatprep.subr.bf16.mxu0 %v2537_v7  ;;  %v296_v17 = vand.u32 4294901760, %v200_v13  ;;  %v449_v39 = vand.u32 4294901760, %v2564_v42 }
  0xa4   :  { %2125 = vmatpush3.bf16.msra.mxu0 %v2537_v7  ;;  %v138_v23 = vadd.f32 %v130_v19, %v86_v21 }
  0xa5   :  { %v2600_v5 = vsub.f32 %v200_v13, %v296_v17  ;;  %v284_v13 = vsel %vm261_vm0, %v212_v3, 0  ;;  %v450_v21 = vsub.f32 %v2564_v42, %v449_v39 }
  0xa6   :  { %v162_v12 = vpop.permute.xlu1 %161  ;;  %v194_v34 = vadd.f32 %v177_v31, %v138_v23  ;;  %v443_v23 = vsub.f32 %v2576_v52, %v442_v4  ;;  %v2644_v36 = vand.u32 4294901760, %v284_v13 }
  0xa7   :  { %v191_v14 = vadd.f32 %v162_v12, %v135_v11 }
  0xa8   :  { %v202_v43 = vmax.f32 %v194_v34, 0.0 }
  0xa9   :  { %v199_v15 = vmax.f32 %v191_v14, 0.0  ;;  %v381_v14 = vand.u32 4294901760, %v2587_v62 }
  0xaa   :  { %v70_v16 = vpop.permute.xlu1 %69  ;;  %v302_v59 = vand.u32 4294901760, %v202_v43 }
  0xab   :  { %v293_v18 = vand.u32 4294901760, %v199_v15  ;;  %v87_v40 = vmul.f32 %v2527_v46, %v70_v16  ;;  %v2612_v16 = vand.u32 4294901760, %v278_v60  ;;  %v382_v33 = vsub.f32 %v2587_v62, %v381_v14 }
  0xac   :  { %v2632_v29 = vsub.f32 %v202_v43, %v302_v59 }
  0xad   :  { %v2542_v20 = vpack.c.bf16 %v296_v17, %v293_v18  ;;  %v139_v57 = vadd.f32 %v131_v49, %v87_v40  ;;  %v2593_v0 = vsub.f32 %v199_v15, %v293_v18  ;;  %v2610_v15 = vsub.f32 %v272_v37, %v2581_v54 }
  0xae   :  { %v75_v22 = vpop.permute.xlu1 %74  ;;  %v2642_v35 = vsub.f32 %v278_v60, %v2612_v16  ;;  %v451_v37 = vand.u32 4294901760, %v450_v21  ;;  %v401_v49 = vand.u32 4294901760, %v2628_v24  ;;  %v477_v51 = vand.u32 4294901760, %v2632_v29 }
  0xaf   :  { %2127 = vmatprep.subr.bf16.mxu0 %v2542_v20  ;;  %v456_v17 = vand.u32 4294901760, %v2593_v0  ;;  %v391_v34 = vand.u32 4294901760, %v2610_v15  ;;  %v2669_v60 = vsub.f32 %v284_v13, %v2644_v36  ;;  %v383_v3 = vand.u32 4294901760, %v382_v33 }
  0xb0   :  { %2129 = vmatpush3.bf16.msra.mxu0 %v2542_v20  ;;  %v478_v13 = vsub.f32 %v2632_v29, %v477_v51 }
  0xb1   :  { %v457_v43 = vsub.f32 %v2593_v0, %v456_v17 }
  0xb3   :  { %v119_v32 = vpop.permute.xlu1 %118 }
  0xb4   :  { %v132_v55 = vmul.f32 %v2525_v45, %v119_v32  ;;  %v88_v45 = vmul.f32 %v2527_v46, %v75_v22  ;;  %v281_v46 = vsel %vm261_vm0, %v211_v63, 0  ;;  %v463_v22 = vand.u32 4294901760, %v2600_v5 }
  0xb5   :  { %v2630_v27 = vand.u32 4294901760, %v281_v46  ;;  %v372_v32 = vsub.f32 %v2579_v53, %v371_v6 }
  0xb6   :  { %v140_v11 = vadd.f32 %v132_v55, %v88_v45  ;;  %v464_v48 = vsub.f32 %v2600_v5, %v463_v22 }
  0xb7   :  { %v373_v58 = vand.u32 4294901760, %v372_v32  ;;  %v431_v32 = vand.u32 4294901760, %v2669_v60 }
  0xb8   :  { %v172_v44 = vpop.permute.xlu1 %171 }
  0xb9   :  { %v193_v50 = vadd.f32 %v172_v44, %v137_v41  ;;  %v444_v44 = vand.u32 4294901760, %v443_v23 }
  0xbb   :  { %v201_v56 = vmax.f32 %v193_v50, 0.0  ;;  %v2655_v50 = vsub.f32 %v281_v46, %v2630_v27  ;;  %v2138_v45 = vpack.c.bf16 %v451_v37, %v444_v44  ;;  %v479_v37 = vand.u32 4294901760, %v478_v13 }
  0xbc   :  { %v182_v61 = vpop.permute.xlu1 %181 }
  0xbd   :  { %v299_v1 = vand.u32 4294901760, %v201_v56  ;;  %v195_v2 = vadd.f32 %v182_v61, %v139_v57  ;;  %v411_v61 = vand.u32 4294901760, %v2642_v35 }
  0xbf   :  { %v2605_v9 = vpack.c.bf16 %v302_v59, %v299_v1  ;;  %v203_v10 = vmax.f32 %v195_v2, 0.0  ;;  %v2616_v18 = vsub.f32 %v201_v56, %v299_v1  ;;  %v392_v59 = vsub.f32 %v2610_v15, %v391_v34 }
  0xc0   :  { %v187_v12 = vpop.permute.xlu1 %186  ;;  %v458_v1 = vand.u32 4294901760, %v457_v43  ;;  %v412_v21 = vsub.f32 %v2642_v35, %v411_v61 }
  0xc1   :  { %v196_v19 = vadd.f32 %v187_v12, %v140_v11  ;;  %2131 = vmatprep.subr.bf16.mxu0 %v2605_v9  ;;  %v305_v30 = vand.u32 4294901760, %v203_v10  ;;  %v470_v40 = vand.u32 4294901760, %v2616_v18  ;;  %v421_v11 = vand.u32 4294901760, %v2655_v50 }
  0xc2   :  { %2133 = vmatpush3.bf16.msra.mxu0 %v2605_v9  ;;  %v465_v12 = vand.u32 4294901760, %v464_v48  ;;  %v413_v48 = vand.u32 4294901760, %v412_v21  ;;  %v2162_v13 = vpack.c.bf16 %v2632_v29, %v2616_v18  ;;  %v2186_v21 = vpack.c.bf16 %v449_v39, %v442_v4 }
  0xc3   :  { %v204_v31 = vmax.f32 %v196_v19, 0.0  ;;  %v2658_v55 = vsub.f32 %v203_v10, %v305_v30  ;;  %v471_v2 = vsub.f32 %v2616_v18, %v470_v40  ;;  %v402_v10 = vsub.f32 %v2628_v24, %v401_v49 }
  0xc4   :  { %v393_v19 = vand.u32 4294901760, %v392_v59  ;;  %v2142_v23 = vpack.c.bf16 %v465_v12, %v458_v1  ;;  %v432_v59 = vsub.f32 %v2669_v60, %v431_v32  ;;  %v2158_v12 = vpack.c.bf16 %v2600_v5, %v2593_v0 }
  0xc5   :  { %v308_v41 = vand.u32 4294901760, %v204_v31  ;;  %v484_v46 = vand.u32 4294901760, %v2658_v55  ;;  %v403_v33 = vand.u32 4294901760, %v402_v10  ;;  %v2154_v10 = vpack.c.bf16 %v2564_v42, %v2576_v52  ;;  %v224_v42 = vpop.permute.xlu0 %223 }
  0xc7   :  { %v2660_v56 = vpack.c.bf16 %v308_v41, %v305_v30  ;;  %v2662_v57 = vsub.f32 %v204_v31, %v308_v41  ;;  %v472_v30 = vand.u32 4294901760, %v471_v2  ;;  %v422_v41 = vsub.f32 %v2655_v50, %v421_v11 }
  0xc8   :  { %v485_v43 = vsub.f32 %v2658_v55, %v484_v46 }
  0xc9   :  { %v491_v63 = vand.u32 4294901760, %v2662_v57  ;;  %2135 = vmatprep.subr.bf16.mxu0 %v2660_v56  ;;  %v2146_v44 = vpack.c.bf16 %v479_v37, %v472_v30  ;;  %v234_v39 = vpop.permute.xlu0 %233 }
  0xca   :  { %2137 = vmatpush3.bf16.msra.mxu0 %v2660_v56  ;;  %v486_v1 = vand.u32 4294901760, %v485_v43 }
  0xcb   :  { %2139 = vmatprep.subr.bf16.mxu0 %v2138_v45  ;;  %v492_v31 = vsub.f32 %v2662_v57, %v491_v63 }
  0xcd   :  { %1857 = vmatmul.mubr.f32.vlgmr.msra.gmra.mrb[0].mxu0 %v373_v58  ;;  %v493_v58 = vand.u32 4294901760, %v492_v31 }
  0xce   :  { %2141 = vmatpush3.bf16.msra.mxu0 %v2138_v45  ;;  %1859 = vmatprep.mubr.f32.mxu0 %v383_v3  ;;  %v423_v45 = vand.u32 4294901760, %v422_v41  ;;  %v433_v3 = vand.u32 4294901760, %v432_v59 }
  0xcf   :  { %2143 = vmatprep.subr.bf16.mxu0 %v2142_v23  ;;  %v2150_v2 = vpack.c.bf16 %v493_v58, %v486_v1 }
  0xd1   :  { %1860 = vmatmul.mubr.f32.gmra.mrb[2].mxu0 %v393_v19  ;;  %v2166_v19 = vpack.c.bf16 %v2662_v57, %v2658_v55 }
  0xd2   :  { %2145 = vmatpush3.bf16.msra.mxu0 %v2142_v23  ;;  %1862 = vmatprep.mubr.f32.mxu0 %v403_v33  ;;  %v2190_v23 = vpack.c.bf16 %v463_v22, %v456_v17 }
  0xd3   :  { %2147 = vmatprep.subr.bf16.mxu0 %v2146_v44 }
  0xd5   :  { %1863 = vmatmul.mubr.f32.gmra.mrb[4].mxu0 %v413_v48 }
  0xd6   :  { %2149 = vmatpush3.bf16.msra.mxu0 %v2146_v44  ;;  %1865 = vmatprep.mubr.f32.mxu0 %v423_v45 }
  0xd7   :  { %2151 = vmatprep.subr.bf16.mxu0 %v2150_v2 }
  0xd9   :  { %1866 = vmatmul.mubr.f32.gmra.mrb[6].mxu0 %v433_v3 }
  0xda   :  { %2153 = vmatpush3.bf16.msra.mxu0 %v2150_v2  ;;  %1884 = vmatprep.mubr.f32.mxu0 %v2502_v25 }
  0xdb   :  { %2155 = vmatprep.subr.bf16.mxu0 %v2154_v10 }
  0xdd   :  { %1885 = vmatmul.mubr.f32.vlgmr.msra.gmra.mrb[0].mxu0 %v2560_v38 }
  0xde   :  { %2157 = vmatpush3.bf16.msra.mxu0 %v2154_v10  ;;  %1887 = vmatprep.mubr.f32.mxu0 %v2566_v47 }
  0xdf   :  { %2159 = vmatprep.subr.bf16.mxu0 %v2158_v12 }
  0xe1   :  { %1888 = vmatmul.mubr.f32.gmra.mrb[2].mxu0 %v2581_v54 }
  0xe2   :  { %2161 = vmatpush3.bf16.msra.mxu0 %v2158_v12  ;;  %1890 = vmatprep.mubr.f32.mxu0 %v2603_v8 }
  0xe3   :  { %2163 = vmatprep.subr.bf16.mxu0 %v2162_v13 }
  0xe5   :  { %1891 = vmatmul.mubr.f32.gmra.mrb[4].mxu0 %v2612_v16 }
  0xe6   :  { %2165 = vmatpush3.bf16.msra.mxu0 %v2162_v13  ;;  %1893 = vmatprep.mubr.f32.mxu0 %v2630_v27 }
  0xe7   :  { %2167 = vmatprep.subr.bf16.mxu0 %v2166_v19 }
  0xe9   :  { %1894 = vmatmul.mubr.f32.gmra.mrb[6].mxu0 %v2644_v36 }
  0xea   :  { %2169 = vmatpush3.bf16.msra.mxu0 %v2166_v19  ;;  %1912 = vmatprep.mubr.f32.mxu0 %v2505_v26  ;;  %v2194_v26 = vpack.c.bf16 %v477_v51, %v470_v40 }
  0xeb   :  { %2171 = vmatprep.subr.bf16.mxu0 %v2537_v7 }
  0xed   :  { %1913 = vmatmul.mubr.f32.vlgmr.msra.gmra.mrb[0].mxu0 %v2579_v53 }
  0xee   :  { %2173 = vmatpush3.bf16.msra.mxu0 %v2537_v7  ;;  %1915 = vmatprep.mubr.f32.mxu0 %v2587_v62 }
  0xef   :  { %2175 = vmatprep.subr.bf16.mxu0 %v2542_v20 }
  0xf1   :  { %1916 = vmatmul.mubr.f32.gmra.mrb[2].mxu0 %v2610_v15 }
  0xf2   :  { %2177 = vmatpush3.bf16.msra.mxu0 %v2542_v20  ;;  %1918 = vmatprep.mubr.f32.mxu0 %v2628_v24  ;;  %v244_v24 = vpop.permute.xlu0 %243 }
  0xf3   :  { %2179 = vmatprep.subr.bf16.mxu0 %v2605_v9 }
  0xf5   :  { %1919 = vmatmul.mubr.f32.gmra.mrb[4].mxu0 %v2642_v35 }
  0xf6   :  { %2181 = vmatpush3.bf16.msra.mxu0 %v2605_v9  ;;  %1921 = vmatprep.mubr.f32.mxu0 %v2655_v50  ;;  %v254_v48 = vpop.permute.xlu0 %253 }
  0xf7   :  { %2183 = vmatprep.subr.bf16.mxu0 %v2660_v56 }
  0xf9   :  { %1922 = vmatmul.mubr.f32.gmra.mrb[6].mxu0 %v2669_v60 }
  0xfa   :  { %2185 = vmatpush3.bf16.msra.mxu0 %v2660_v56  ;;  %1940 = vmatprep.mubr.f32.mxu0 %v361_v28  ;;  %v2198_v28 = vpack.c.bf16 %v491_v63, %v484_v46 }
  0xfb   :  { %2187 = vmatprep.subr.bf16.mxu0 %v2186_v21 }
  0xfd   :  { %1941 = vmatmul.mubr.f32.vlgmr.msra.gmra.mrb[0].mxu0 %v371_v6 }
  0xfe   :  { %2189 = vmatpush3.bf16.msra.mxu0 %v2186_v21  ;;  %1943 = vmatprep.mubr.f32.mxu0 %v381_v14 }
  0xff   :  { %2191 = vmatprep.subr.bf16.mxu0 %v2190_v23 }
 0x101   :  { %1944 = vmatmul.mubr.f32.gmra.mrb[2].mxu0 %v391_v34 }
 0x102   :  { %2193 = vmatpush3.bf16.msra.mxu0 %v2190_v23  ;;  %1946 = vmatprep.mubr.f32.mxu0 %v401_v49 }
 0x103   :  { %2195 = vmatprep.subr.bf16.mxu0 %v2194_v26 }
 0x105   :  { %1947 = vmatmul.mubr.f32.gmra.mrb[4].mxu0 %v411_v61 }
 0x106   :  { %2197 = vmatpush3.bf16.msra.mxu0 %v2194_v26  ;;  %1949 = vmatprep.mubr.f32.mxu0 %v421_v11 }
 0x107   :  { %2199 = vmatprep.subr.bf16.mxu0 %v2198_v28 }
 0x109   :  { %1950 = vmatmul.mubr.f32.gmra.mrb[6].mxu0 %v431_v32 }
 0x10a   :  { %2201 = vmatpush3.bf16.msra.mxu0 %v2198_v28  ;;  %1968 = vmatprep.mubr.f32.mxu0 %v2502_v25 }
 0x10b   :  { %2203 = vmatprep.subr.bf16.mxu0 %v2537_v7 }
 0x10d   :  { %1969 = vmatmul.mubr.f32.vlgmr.msra.gmra.mrb[0].mxu0 %v2560_v38 }
 0x10e   :  { %2205 = vmatpush3.bf16.msra.mxu0 %v2537_v7  ;;  %1971 = vmatprep.mubr.f32.mxu0 %v2566_v47  ;;  %v2391_v7 = vmov 0.0|0.0  }
 0x10f   :  { %2207 = vmatprep.subr.bf16.mxu0 %v2542_v20  ;;  %2218 = vmatprep.subr.bf16.mxu1 %v2391_v7 }
 0x111   :  { %1972 = vmatmul.mubr.f32.gmra.mrb[2].mxu0 %v2581_v54 }
 0x112   :  { %2209 = vmatpush3.bf16.msra.mxu0 %v2542_v20  ;;  %1974 = vmatprep.mubr.f32.mxu0 %v2603_v8  ;;  %v2393_v20 = vmov 0.0  }
 0x113   :  { %2211 = vmatprep.subr.bf16.mxu0 %v2605_v9  ;;  %2024 = vmatprep.mubr.msk.f32.mxu1 %vm2392_vm1, %v2393_v20 }
 0x115   :  { %1975 = vmatmul.mubr.f32.gmra.mrb[4].mxu0 %v2612_v16 }
 0x116   :  { %2213 = vmatpush3.bf16.msra.mxu0 %v2605_v9  ;;  %1977 = vmatprep.mubr.f32.mxu0 %v2630_v27 }
 0x117   :  { %2215 = vmatprep.subr.bf16.mxu0 %v2660_v56 }
 0x119   :  { %1978 = vmatmul.mubr.f32.gmra.mrb[6].mxu0 %v2644_v36 }
 0x11a   :  { %2217 = vmatpush3.bf16.msra.mxu0 %v2660_v56  ;;  %1996 = vmatprep.mubr.f32.mxu0 %v2502_v25  ;;  %v1132_v25 = vld [vmem:[%s2907_s5] sm:$0x1] }
 0x11d   :  { %1997 = vmatmul.mubr.f32.vlgmr.msra.gmra.mrb[0].mxu0 %v2560_v38  ;;  %v229_v38 = vpop.permute.xlu1 %228 }
 0x11e   :  { %1999 = vmatprep.mubr.f32.mxu0 %v2566_v47  ;;  %v1136_v47 = vsel %vm261_vm0, %v1132_v25, 0 }
 0x11f   :  { %v2796_v52 = vand.u32 4294901760, %v1136_v47 }
 0x121   :  { %2000 = vmatmul.mubr.f32.gmra.mrb[2].mxu0 %v2581_v54  ;;  %v239_v53 = vpop.permute.xlu1 %238  ;;  %v2799_v6 = vsub.f32 %v1136_v47, %v2796_v52 }
 0x122   :  { %2002 = vmatprep.mubr.f32.mxu0 %v2603_v8 }
 0x123   :  { %v1213_v34 = vand.u32 4294901760, %v2799_v6 }
 0x125   :  { %2003 = vmatmul.mubr.f32.gmra.mrb[4].mxu0 %v2612_v16  ;;  %v249_v17 = vpop.permute.xlu1 %248  ;;  %v1214_v31 = vsub.f32 %v2799_v6, %v1213_v34 }
 0x126   :  { %2005 = vmatprep.mubr.f32.mxu0 %v2630_v27 }
 0x129   :  { %2006 = vmatmul.mubr.f32.gmra.mrb[6].mxu0 %v2644_v36  ;;  %v259_v32 = vpop.permute.xlu1 %258 }
 0x1f0   :  { %v1998_v54 = vpop.f32.mrb[0].mxu0 }
 0x1f1   :  { %v2290_v62 = vadd.f32 %v1998_v54, %v229_v38  ;;  %v1078_v0 = vpop.f32.mrb[1].mxu0 }
 0x1f2   :  { %v2291_v4 = vadd.f32 %v1078_v0, %v224_v42 }
 0x1f3   :  { %v1125_v5 = vmax.f32 %v2290_v62, 0.0 }
 0x1f4   :  { %v1124_v8 = vmax.f32 %v2291_v4, 0.0  ;;  %v2001_v9 = vpop.f32.mrb[2].mxu0 }
 0x1f5   :  { %v1142_v14 = vand.u32 4294901760, %v1125_v5  ;;  %v2292_v15 = vadd.f32 %v2001_v9, %v239_v53  ;;  %v1090_v16 = vpop.f32.mrb[3].mxu0 }
 0x1f6   :  { %v1139_v18 = vand.u32 4294901760, %v1124_v8  ;;  %v2293_v22 = vadd.f32 %v1090_v16, %v234_v39 }
 0x1f7   :  { %v2801_v27 = vsub.f32 %v1125_v5, %v1142_v14  ;;  %v1127_v29 = vmax.f32 %v2292_v15, 0.0 }
 0x1f8   :  { %v2804_v35 = vsub.f32 %v1124_v8, %v1139_v18  ;;  %v1126_v36 = vmax.f32 %v2293_v22, 0.0  ;;  %v2004_v40 = vpop.f32.mrb[4].mxu0  ;;  %v2806_v49 = vpack.c.bf16 %v1142_v14, %v1139_v18 }
 0x1f9   :  { %v1231_v50 = vand.u32 4294901760, %v2801_v27  ;;  %v1148_v51 = vand.u32 4294901760, %v1127_v29  ;;  %v2294_v55 = vadd.f32 %v2004_v40, %v249_v17  ;;  %v1102_v56 = vpop.f32.mrb[5].mxu0 }
 0x1fa   :  { %v1224_v57 = vand.u32 4294901760, %v2804_v35  ;;  %v1145_v61 = vand.u32 4294901760, %v1126_v36  ;;  %v2295_v60 = vadd.f32 %v1102_v56, %v244_v24  ;;  %2220 = vmatpush3.bf16.msra.mxu1 %v2806_v49  ;;  %v2243_v63 = vpack.c.bf16 %v2801_v27, %v2804_v35 }
 0x1fb   :  { %v1232_v11 = vsub.f32 %v2801_v27, %v1231_v50  ;;  %v2814_v46 = vsub.f32 %v1127_v29, %v1148_v51  ;;  %v1129_v30 = vmax.f32 %v2294_v55, 0.0  ;;  %2221 = vmatprep.subr.bf16.mxu1 %v2391_v7 }
 0x1fc   :  { %v1225_v33 = vsub.f32 %v2804_v35, %v1224_v57  ;;  %v2821_v41 = vsub.f32 %v1126_v36, %v1145_v61  ;;  %v1128_v37 = vmax.f32 %v2295_v60, 0.0  ;;  %v2007_v43 = vpop.f32.mrb[6].mxu0  ;;  %v2823_v44 = vpack.c.bf16 %v1148_v51, %v1145_v61 }
 0x1fd   :  { %v1233_v58 = vand.u32 4294901760, %v1232_v11  ;;  %v1245_v59 = vand.u32 4294901760, %v2814_v46  ;;  %v1154_v45 = vand.u32 4294901760, %v1129_v30  ;;  %v2296_v1 = vadd.f32 %v2007_v43, %v259_v32  ;;  %v1114_v2 = vpop.f32.mrb[7].mxu0 }
 0x1fe   :  { %v1226_v3 = vand.u32 4294901760, %v1225_v33  ;;  %v1238_v10 = vand.u32 4294901760, %v2821_v41  ;;  %v1151_v12 = vand.u32 4294901760, %v1128_v37  ;;  %v2297_v13 = vadd.f32 %v1114_v2, %v254_v48  ;;  %2223 = vmatpush3.bf16.msra.mxu1 %v2823_v44 }
 0x1ff   :  { %v1246_v19 = vsub.f32 %v2814_v46, %v1245_v59  ;;  %v1258_v21 = vsub.f32 %v1129_v30, %v1154_v45  ;;  %v1131_v23 = vmax.f32 %v2296_v1, 0.0  ;;  %2224 = vmatprep.subr.bf16.mxu1 %v2391_v7  ;;  %v2246_v26 = vpack.c.bf16 %v2814_v46, %v2821_v41 }
 0x200   :  { %v1239_v28 = vsub.f32 %v2821_v41, %v1238_v10  ;;  %v1251_v25 = vsub.f32 %v1128_v37, %v1151_v12  ;;  %v1130_v38 = vmax.f32 %v2297_v13, 0.0  ;;  %v2833_v42 = vpack.c.bf16 %v1154_v45, %v1151_v12 }
 0x201   :  { %v1247_v47 = vand.u32 4294901760, %v1246_v19  ;;  %v1259_v53 = vand.u32 4294901760, %v1258_v21  ;;  %v1160_v54 = vand.u32 4294901760, %v1131_v23  ;;  %v2231_v39 = vpack.c.bf16 %v1233_v58, %v1226_v3 }
 0x202   :  { %v1240_v62 = vand.u32 4294901760, %v1239_v28  ;;  %v1252_v0 = vand.u32 4294901760, %v1251_v25  ;;  %v1157_v4 = vand.u32 4294901760, %v1130_v38  ;;  %2226 = vmatpush3.bf16.msra.mxu1 %v2833_v42  ;;  %v2249_v5 = vpack.c.bf16 %v1258_v21, %v1251_v25 }
 0x203   :  { %v1260_v8 = vsub.f32 %v1258_v21, %v1259_v53  ;;  %v1272_v9 = vsub.f32 %v1131_v23, %v1160_v54  ;;  %2227 = vmatprep.subr.bf16.mxu1 %v2391_v7  ;;  %v2267_v14 = vpack.c.bf16 %v1231_v50, %v1224_v57  ;;  %v2270_v15 = vpack.c.bf16 %v1245_v59, %v1238_v10 }
 0x204   :  { %v1253_v16 = vsub.f32 %v1251_v25, %v1252_v0  ;;  %v1265_v17 = vsub.f32 %v1130_v38, %v1157_v4  ;;  %v2837_v18 = vpack.c.bf16 %v1160_v54, %v1157_v4  ;;  %v2234_v22 = vpack.c.bf16 %v1247_v47, %v1240_v62 }
 0x205   :  { %v1261_v24 = vand.u32 4294901760, %v1260_v8  ;;  %v1273_v29 = vand.u32 4294901760, %v1272_v9  ;;  %v1215_v36 = vand.u32 4294901760, %v1214_v31  ;;  %v2273_v40 = vpack.c.bf16 %v1259_v53, %v1252_v0 }
 0x206   :  { %v1254_v51 = vand.u32 4294901760, %v1253_v16  ;;  %v1266_v55 = vand.u32 4294901760, %v1265_v17  ;;  %2229 = vmatpush3.bf16.msra.mxu1 %v2837_v18  ;;  %v2252_v56 = vpack.c.bf16 %v1272_v9, %v1265_v17 }
 0x207   :  { %v1274_v61 = vsub.f32 %v1272_v9, %v1273_v29  ;;  %2230 = vmatprep.subr.bf16.mxu1 %v2391_v7 }
 0x208   :  { %v1267_v60 = vsub.f32 %v1265_v17, %v1266_v55  ;;  %v2237_v50 = vpack.c.bf16 %v1261_v24, %v1254_v51  ;;  %v2276_v57 = vpack.c.bf16 %v1273_v29, %v1266_v55 }
 0x209   :  { %v1275_v11 = vand.u32 4294901760, %v1274_v61  ;;  %2025 = vmatmul.mubr.f32.vlgmr.msra.gmra.mrb[0].mxu1 %v1215_v36 }
 0x20a   :  { %v1268_v46 = vand.u32 4294901760, %v1267_v60  ;;  %2232 = vmatpush3.bf16.msra.mxu1 %v2231_v39  ;;  %2043 = vmatprep.mubr.msk.f32.mxu1 %vm2392_vm1, %v2393_v20 }
 0x20b   :  { %2233 = vmatprep.subr.bf16.mxu1 %v2391_v7 }
 0x20c   :  { %v2240_v30 = vpack.c.bf16 %v1275_v11, %v1268_v46 }
 0x20e   :  { %2235 = vmatpush3.bf16.msra.mxu1 %v2234_v22 }
 0x20f   :  { %2236 = vmatprep.subr.bf16.mxu1 %v2391_v7 }
 0x212   :  { %2238 = vmatpush3.bf16.msra.mxu1 %v2237_v50 }
 0x213   :  { %2239 = vmatprep.subr.bf16.mxu1 %v2391_v7 }
 0x216   :  { %2241 = vmatpush3.bf16.msra.mxu1 %v2240_v30 }
 0x217   :  { %2242 = vmatprep.subr.bf16.mxu1 %v2391_v7 }
 0x219   :  { %2044 = vmatmul.mubr.f32.vlgmr.msra.gmra.mrb[0].mxu1 %v2796_v52 }
 0x21a   :  { %2244 = vmatpush3.bf16.msra.mxu1 %v2243_v63  ;;  %2062 = vmatprep.mubr.msk.f32.mxu1 %vm2392_vm1, %v2393_v20 }
 0x21b   :  { %2245 = vmatprep.subr.bf16.mxu1 %v2391_v7 }
 0x21e   :  { %2247 = vmatpush3.bf16.msra.mxu1 %v2246_v26 }
 0x21f   :  { %2248 = vmatprep.subr.bf16.mxu1 %v2391_v7 }
 0x222   :  { %2250 = vmatpush3.bf16.msra.mxu1 %v2249_v5 }
 0x223   :  { %2251 = vmatprep.subr.bf16.mxu1 %v2391_v7 }
 0x226   :  { %2253 = vmatpush3.bf16.msra.mxu1 %v2252_v56 }
 0x227   :  { %2254 = vmatprep.subr.bf16.mxu1 %v2391_v7 }
 0x229   :  { %2063 = vmatmul.mubr.f32.vlgmr.msra.gmra.mrb[0].mxu1 %v2799_v6  ;;  %v1134_v6 = vstv %s2908_s6 }
 0x22a   :  { %2256 = vmatpush3.bf16.msra.mxu1 %v2806_v49  ;;  %2081 = vmatprep.mubr.msk.f32.mxu1 %vm2392_vm1, %v2393_v20 }
 0x22b   :  { %2257 = vmatprep.subr.bf16.mxu1 %v2391_v7 }
 0x22e   :  { %2259 = vmatpush3.bf16.msra.mxu1 %v2823_v44 }
 0x22f   :  { %2260 = vmatprep.subr.bf16.mxu1 %v2391_v7 }
 0x232   :  { %2262 = vmatpush3.bf16.msra.mxu1 %v2833_v42 }
 0x233   :  { %2263 = vmatprep.subr.bf16.mxu1 %v2391_v7 }
 0x236   :  { %2265 = vmatpush3.bf16.msra.mxu1 %v2837_v18 }
 0x237   :  { %2266 = vmatprep.subr.bf16.mxu1 %v2391_v7 }
 0x239   :  { %2082 = vmatmul.mubr.f32.vlgmr.msra.gmra.mrb[0].mxu1 %v1213_v34 }
 0x23a   :  { %2268 = vmatpush3.bf16.msra.mxu1 %v2267_v14  ;;  %2100 = vmatprep.mubr.msk.f32.mxu1 %vm2392_vm1, %v2393_v20 }
 0x23b   :  { %2269 = vmatprep.subr.bf16.mxu1 %v2391_v7 }
 0x23e   :  { %2271 = vmatpush3.bf16.msra.mxu1 %v2270_v15 }
 0x23f   :  { %2272 = vmatprep.subr.bf16.mxu1 %v2391_v7 }
 0x242   :  { %2274 = vmatpush3.bf16.msra.mxu1 %v2273_v40 }
 0x243   :  { %2275 = vmatprep.subr.bf16.mxu1 %v2391_v7 }
 0x246   :  { %2277 = vmatpush3.bf16.msra.mxu1 %v2276_v57 }
 0x247   :  { %2278 = vmatprep.subr.bf16.mxu1 %v2391_v7 }
 0x249   :  { %2101 = vmatmul.mubr.f32.vlgmr.msra.gmra.mrb[0].mxu1 %v2796_v52 }
 0x24a   :  { %2280 = vmatpush3.bf16.msra.mxu1 %v2806_v49  ;;  %2119 = vmatprep.mubr.msk.f32.mxu1 %vm2392_vm1, %v2393_v20 }
 0x24b   :  { %2281 = vmatprep.subr.bf16.mxu1 %v2391_v7 }
 0x24e   :  { %2283 = vmatpush3.bf16.msra.mxu1 %v2823_v44 }
 0x24f   :  { %2284 = vmatprep.subr.bf16.mxu1 %v2391_v7 }
 0x252   :  { %2286 = vmatpush3.bf16.msra.mxu1 %v2833_v42 }
 0x253   :  { %2287 = vmatprep.subr.bf16.mxu1 %v2391_v7 }
 0x256   :  { %2289 = vmatpush3.bf16.msra.mxu1 %v2837_v18 }
 0x259   :  { %2120 = vmatmul.mubr.f32.vlgmr.msra.gmra.mrb[0].mxu1 %v2796_v52 }
 0x32c   :  { %v1671_v20 = vpop.f32.mrb[0].mxu1 }
 0x32d   :  { %v2298_v27 = vadd.f32 %v1671_v20, %v1134_v6  ;;  %v2121_v34 = vpop.f32.mrb[1].mxu1 }
 0x32f   :  { %1675 = vst [vmem:[#allocation3] sm:$0x1] %v2298_v27 }
 0x330   :  { %2376 = shalt.err (!%p2373_p4)
}
 0x331   :  { %s2377_s23 = scalar_lea.hbm %s2909_s7, 16 }
 0x332   :  { %p2378_p5 = scmp.ne.s32.totalorder %s2909_s7, %s2377_s23  ;;  %p2381_p6 = scmp.lt.u32.totalorder %s2377_s23, %s2909_s7 }
 0x334   :  { %p2383_p7 = pnand %p2381_p6, %p2378_p5 }
 0x336   :  { %2386 = shalt.err (!%p2383_p7)
}
 0x337   :  { %1685 = dma.vmem_to_hbm [thread:$0]  %s1683_s19, 16, %s2909_s7, [#allocation4]  }
 0x338   :  { %2387 = dma.done.wait [#allocation4], 16  }
 0x339   :  { %2388 = vsyncadd [#allocation4], 4294967280 }
 0x33a   :  { %1689 = vsyncpa [#allocation4], 1 }

</bundles_post_ra>
